<compile_context>
chip_gen: v7x
topology: tpu7x:2x2x1
jax: 0.10.0
libtpu: 0.0.40
codegen_flags: <defaults>
</compile_context>

<pallas_src>
import jax
import jax.numpy as jnp
from jax.experimental import pallas as pl
from jax.experimental.pallas import tpu as pltpu

EPS = 1e-5  # nn.InstanceNorm2d default eps


def _make_kernel(K, H, W, C):
    HW = H * W
    p = K // 2
    taps = [(kh, kw) for kh in range(K) for kw in range(K)]
    center = p * K + p

    def instance_norm(acc, gamma, beta, relu):
        # acc: [C, HW] f32; gamma/beta: [C, 1]. Biased variance, eps as in InstanceNorm2d.
        inv_n = 1.0 / HW
        s1 = jnp.sum(acc, axis=1, keepdims=True)
        s2 = jnp.sum(acc * acc, axis=1, keepdims=True)
        mean = s1 * inv_n
        var = s2 * inv_n - mean * mean               # one-pass stats
        scale = gamma * jax.lax.rsqrt(var + EPS)     # fold affine gamma into the scale
        out = (acc - mean) * scale + beta
        if relu:
            out = jnp.maximum(out, 0.0)
        return out

    def kernel(cols1_ref, x_ref, w1_ref, w2_ref, aff_ref, masks_ref, o_ref):
        # ---- conv1: one matmul over the prebuilt lane-dense im2col slab ----
        acc1 = jnp.dot(w1_ref[...], cols1_ref[0],
                       preferred_element_type=jnp.float32)          # [C, HW]
        y = instance_norm(acc1, aff_ref[0], aff_ref[1], relu=True)  # ReLU activation

        # ---- conv2: shifted windows of the in-VMEM activation via roll + mask ----
        acc2 = None
        for t, (kh, kw) in enumerate(taps):
            dh, dw = kh - p, kw - p
            shift = (-(dh * W + dw)) % HW
            win = y if shift == 0 else pltpu.roll(y, shift=shift, axis=1)
            if t != center:
                win = win * masks_ref[t]             # zero-pad boundary mask, [1, HW]
            d = jnp.dot(w2_ref[t], win, preferred_element_type=jnp.float32)
            acc2 = d if acc2 is None else acc2 + d
        z = instance_norm(acc2, aff_ref[2], aff_ref[3], relu=False)  # linear activation

        # Residual add; lane-dense store (last dim = HW, multiple of 128).
        o_ref[0] = z + x_ref[0]

    return kernel


def residual_layer_forward(x, params, K):
    """ResidualLayer.forward: z = conv2(conv1(x)) + x  (pad='zero', stride=1)."""
    N, C, H, W = x.shape
    HW = H * W
    p = K // 2

    # Lane-dense input (also serves as the residual).
    x_flat = x.reshape(N, C, HW)

    # HBM-side im2col for conv1: [N, K*K*C, HW], row order (kh, kw, c_in).
    xpad = jnp.pad(x, ((0, 0), (0, 0), (p, p), (p, p)))
    slabs = [xpad[:, :, kh:kh + H, kw:kw + W].reshape(N, C, HW)
             for kh in range(K) for kw in range(K)]
    cols1 = jnp.concatenate(slabs, axis=1)

    # conv1 weights as one [C_out, K*K*C_in] matrix matching the im2col row order.
    w1m = jnp.transpose(params["w1"], (0, 2, 3, 1)).reshape(C, K * K * C)
    # conv2 weights per tap: [K*K, C_out, C_in], tap index = kh*K + kw.
    w2t = jnp.transpose(params["w2"], (2, 3, 0, 1)).reshape(K * K, C, C)
    # InstanceNorm affine params stacked: rows = [gamma1, beta1, gamma2, beta2].
    aff = jnp.stack([params["g1"], params["be1"],
                     params["g2"], params["be2"]]).reshape(4, C, 1)
    # NOTE: conv biases b1/b2 are intentionally unused — a per-channel constant added
    # before InstanceNorm is exactly cancelled by the mean subtraction.

    # Zero-pad boundary masks for conv2's rolled windows: [K*K, 1, HW].
    hh = jnp.arange(H).reshape(H, 1)
    ww = jnp.arange(W).reshape(1, W)
    mask_list = []
    for kh in range(K):
        for kw in range(K):
            dh, dw = kh - p, kw - p
            valid = ((hh + dh >= 0) & (hh + dh < H) &
                     (ww + dw >= 0) & (ww + dw < W))
            mask_list.append(valid.reshape(1, HW).astype(jnp.float32))
    masks = jnp.stack(mask_list, axis=0)

    kernel = _make_kernel(K, H, W, C)
    out = pl.pallas_call(
        kernel,
        out_shape=jax.ShapeDtypeStruct((N, C, HW), jnp.float32),
        grid_spec=pltpu.PrefetchScalarGridSpec(
            num_scalar_prefetch=0,
            grid=(N,),
            in_specs=[
                pl.BlockSpec((1, K * K * C, HW), lambda n: (n, 0, 0)),  # im2col slab
                pl.BlockSpec((1, C, HW), lambda n: (n, 0, 0)),          # x (residual)
                pl.BlockSpec((C, K * K * C), lambda n: (0, 0)),         # conv1 weights
                pl.BlockSpec((K * K, C, C), lambda n: (0, 0, 0)),       # conv2 tap weights
                pl.BlockSpec((4, C, 1), lambda n: (0, 0, 0)),           # IN affine params
                pl.BlockSpec((K * K, 1, HW), lambda n: (0, 0, 0)),      # boundary masks
            ],
            out_specs=pl.BlockSpec((1, C, HW), lambda n: (n, 0, 0)),
        ),
        compiler_params=pltpu.CompilerParams(
            dimension_semantics=("parallel",)),  # batch across TensorCores on v7x
    )(cols1, x_flat, w1m, w2t, aff, masks)
    return out.reshape(N, C, H, W)


# ----------------------------- pure-JAX reference -----------------------------
def _ref_conv_layer(x, w, b, gamma, beta, K, relu):
    p = K // 2
    xp = jnp.pad(x, ((0, 0), (0, 0), (p, p), (p, p)))
    out = jax.lax.conv_general_dilated(
        xp, w, window_strides=(1, 1), padding="VALID",
        dimension_numbers=("NCHW", "OIHW", "NCHW"))
    out = out + b[None, :, None, None]
    mean = out.mean(axis=(2, 3), keepdims=True)
    var = ((out - mean) ** 2).mean(axis=(2, 3), keepdims=True)
    out = (out - mean) / jnp.sqrt(var + EPS)
    out = out * gamma[None, :, None, None] + beta[None, :, None, None]
    if relu:
        out = jnp.maximum(out, 0.0)
    return out


def _ref_residual_layer(x, params, K):
    y = _ref_conv_layer(x, params["w1"], params["b1"], params["g1"], params["be1"], K, relu=True)
    z = _ref_conv_layer(y, params["w2"], params["b2"], params["g2"], params["be2"], K, relu=False)
    return z + x


# ------------------------------------ main ------------------------------------
if __name__ == "__main__":
    # ResidualLayer(in_ch=4, out_ch=4, kernel_size=3, stride=1, pad='zero', normalization='instance')
    N, C, H, W = 2, 4, 16, 16
    K = 3

    key = jax.random.PRNGKey(0)
    k1, k2, k3, k4, kx = jax.random.split(key, 5)

    params = {
        "w1": 0.1 * jax.random.normal(k1, (C, C, K, K), jnp.float32),
        "b1": 0.1 * jax.random.normal(k2, (C,), jnp.float32),
        "g1": jnp.ones((C,), jnp.float32),    # InstanceNorm2d affine weight init
        "be1": jnp.zeros((C,), jnp.float32),  # InstanceNorm2d affine bias init
        "w2": 0.1 * jax.random.normal(k3, (C, C, K, K), jnp.float32),
        "b2": 0.1 * jax.random.normal(k4, (C,), jnp.float32),
        "g2": jnp.ones((C,), jnp.float32),
        "be2": jnp.zeros((C,), jnp.float32),
    }

    x = jax.random.normal(kx, (N, C, H, W), jnp.float32)

    z = residual_layer_forward(x, params, K)
    z = jax.block_until_ready(z)

    z_ref = _ref_residual_layer(x, params, K)
    assert z.shape == (N, C, H, W)
    assert jnp.allclose(z, z_ref, atol=1e-4, rtol=1e-4), "mismatch vs JAX reference"

    print("KERNEL_OK")
</pallas_src>

<mosaic_0001>
module attributes {stable_mosaic.version = 11 : i64} {
  func.func @kernel(%arg0: i32, %arg1: memref<1x36x256xf32, #tpu.memory_space<vmem>>, %arg2: memref<1x4x256xf32, #tpu.memory_space<vmem>>, %arg3: memref<4x36xf32, #tpu.memory_space<vmem>>, %arg4: memref<9x4x4xf32, #tpu.memory_space<vmem>>, %arg5: memref<4x4x1xf32, #tpu.memory_space<vmem>>, %arg6: memref<9x1x256xf32, #tpu.memory_space<vmem>>, %arg7: memref<1x4x256xf32, #tpu.memory_space<vmem>>) attributes {dimension_semantics = [#tpu.dimension_semantics<parallel>], iteration_bounds = array<i64: 2>, scalar_prefetch = 0 : i64, scratch_operands = 0 : i64, tpu.core_type = #tpu.core_type<tc>, window_params = [{transform_indices = @transform_0, window_bounds = array<i64: 1, 36, 256>}, {transform_indices = @transform_1, window_bounds = array<i64: 1, 4, 256>}, {pipeline_mode = #tpu.pipeline_mode<synchronous>, transform_indices = @transform_2, window_bounds = array<i64: 4, 36>}, {pipeline_mode = #tpu.pipeline_mode<synchronous>, transform_indices = @transform_3, window_bounds = array<i64: 9, 4, 4>}, {pipeline_mode = #tpu.pipeline_mode<synchronous>, transform_indices = @transform_4, window_bounds = array<i64: 4, 4, 1>}, {pipeline_mode = #tpu.pipeline_mode<synchronous>, transform_indices = @transform_5, window_bounds = array<i64: 9, 1, 256>}, {transform_indices = @transform_6, window_bounds = array<i64: 1, 4, 256>}]} {
    %c0 = arith.constant 0 : index
    %c0_0 = arith.constant 0 : index
    %0 = vector.load %arg3[%c0, %c0_0] : memref<4x36xf32, #tpu.memory_space<vmem>>, vector<4x36xf32>
    %c0_1 = arith.constant 0 : index
    %c0_2 = arith.constant 0 : index
    %c0_3 = arith.constant 0 : index
    %1 = vector.load %arg1[%c0_1, %c0_2, %c0_3] : memref<1x36x256xf32, #tpu.memory_space<vmem>>, vector<1x36x256xf32>
    %2 = vector.shape_cast %1 : vector<1x36x256xf32> to vector<36x256xf32>
    %cst = arith.constant dense<0.000000e+00> : vector<4x256xf32>
    %3 = tpu.matmul %0, %2, %cst {dimension_numbers = #tpu.dot_dimension_numbers<[1], [0], [0], [1], [0, 0, 1, 1], [], []>} : vector<4x36xf32>, vector<36x256xf32>, vector<4x256xf32> -> vector<4x256xf32>
    %c0_4 = arith.constant 0 : index
    %c0_5 = arith.constant 0 : index
    %c0_6 = arith.constant 0 : index
    %4 = vector.load %arg5[%c0_4, %c0_5, %c0_6] : memref<4x4x1xf32, #tpu.memory_space<vmem>>, vector<1x4x1xf32>
    %5 = vector.shape_cast %4 : vector<1x4x1xf32> to vector<4x1xf32>
    %c1 = arith.constant 1 : index
    %c0_7 = arith.constant 0 : index
    %c0_8 = arith.constant 0 : index
    %6 = vector.load %arg5[%c1, %c0_7, %c0_8] : memref<4x4x1xf32, #tpu.memory_space<vmem>>, vector<1x4x1xf32>
    %7 = vector.shape_cast %6 : vector<1x4x1xf32> to vector<4x1xf32>
    %cst_9 = arith.constant dense<0.000000e+00> : vector<4xf32>
    %8 = vector.multi_reduction <add>, %3, %cst_9 [1] : vector<4x256xf32> to vector<4xf32>
    %9 = vector.shape_cast %8 : vector<4xf32> to vector<4x1xf32>
    %10 = arith.mulf %3, %3 : vector<4x256xf32>
    %cst_10 = arith.constant dense<0.000000e+00> : vector<4xf32>
    %11 = vector.multi_reduction <add>, %10, %cst_10 [1] : vector<4x256xf32> to vector<4xf32>
    %12 = vector.shape_cast %11 : vector<4xf32> to vector<4x1xf32>
    %cst_11 = arith.constant 3.906250e-03 : f32
    %13 = vector.broadcast %cst_11 : f32 to vector<4x1xf32>
    %14 = arith.mulf %9, %13 : vector<4x1xf32>
    %cst_12 = arith.constant 3.906250e-03 : f32
    %15 = vector.broadcast %cst_12 : f32 to vector<4x1xf32>
    %16 = arith.mulf %12, %15 : vector<4x1xf32>
    %17 = arith.mulf %14, %14 : vector<4x1xf32>
    %18 = arith.subf %16, %17 : vector<4x1xf32>
    %cst_13 = arith.constant 9.99999974E-6 : f32
    %19 = vector.broadcast %cst_13 : f32 to vector<4x1xf32>
    %20 = arith.addf %18, %19 : vector<4x1xf32>
    %21 = math.rsqrt %20 : vector<4x1xf32>
    %22 = arith.mulf %5, %21 : vector<4x1xf32>
    %23 = vector.broadcast %14 : vector<4x1xf32> to vector<4x256xf32>
    %24 = arith.subf %3, %23 : vector<4x256xf32>
    %25 = vector.broadcast %22 : vector<4x1xf32> to vector<4x256xf32>
    %26 = arith.mulf %24, %25 : vector<4x256xf32>
    %27 = vector.broadcast %7 : vector<4x1xf32> to vector<4x256xf32>
    %28 = arith.addf %26, %27 : vector<4x256xf32>
    %cst_14 = arith.constant 0.000000e+00 : f32
    %29 = vector.broadcast %cst_14 : f32 to vector<4x256xf32>
    %30 = arith.maximumf %28, %29 : vector<4x256xf32>
    %c17_i32 = arith.constant 17 : i32
    %31 = tpu.dynamic_rotate %30 by %c17_i32 dim 1 : vector<4x256xf32>, i32 -> vector<4x256xf32>
    %c0_15 = arith.constant 0 : index
    %c0_16 = arith.constant 0 : index
    %c0_17 = arith.constant 0 : index
    %32 = vector.load %arg6[%c0_15, %c0_16, %c0_17] : memref<9x1x256xf32, #tpu.memory_space<vmem>>, vector<1x1x256xf32>
    %33 = vector.shape_cast %32 : vector<1x1x256xf32> to vector<1x256xf32>
    %34 = vector.broadcast %33 : vector<1x256xf32> to vector<4x256xf32>
    %35 = arith.mulf %31, %34 : vector<4x256xf32>
    %c0_18 = arith.constant 0 : index
    %c0_19 = arith.constant 0 : index
    %c0_20 = arith.constant 0 : index
    %36 = vector.load %arg4[%c0_18, %c0_19, %c0_20] : memref<9x4x4xf32, #tpu.memory_space<vmem>>, vector<1x4x4xf32>
    %37 = vector.shape_cast %36 : vector<1x4x4xf32> to vector<4x4xf32>
    %cst_21 = arith.constant dense<0.000000e+00> : vector<4x256xf32>
    %38 = tpu.matmul %37, %35, %cst_21 {dimension_numbers = #tpu.dot_dimension_numbers<[1], [0], [0], [1], [0, 0, 1, 1], [], []>} : vector<4x4xf32>, vector<4x256xf32>, vector<4x256xf32> -> vector<4x256xf32>
    %c16_i32 = arith.constant 16 : i32
    %39 = tpu.dynamic_rotate %30 by %c16_i32 dim 1 : vector<4x256xf32>, i32 -> vector<4x256xf32>
    %c1_22 = arith.constant 1 : index
    %c0_23 = arith.constant 0 : index
    %c0_24 = arith.constant 0 : index
    %40 = vector.load %arg6[%c1_22, %c0_23, %c0_24] : memref<9x1x256xf32, #tpu.memory_space<vmem>>, vector<1x1x256xf32>
    %41 = vector.shape_cast %40 : vector<1x1x256xf32> to vector<1x256xf32>
    %42 = vector.broadcast %41 : vector<1x256xf32> to vector<4x256xf32>
    %43 = arith.mulf %39, %42 : vector<4x256xf32>
    %c1_25 = arith.constant 1 : index
    %c0_26 = arith.constant 0 : index
    %c0_27 = arith.constant 0 : index
    %44 = vector.load %arg4[%c1_25, %c0_26, %c0_27] : memref<9x4x4xf32, #tpu.memory_space<vmem>>, vector<1x4x4xf32>
    %45 = vector.shape_cast %44 : vector<1x4x4xf32> to vector<4x4xf32>
    %cst_28 = arith.constant dense<0.000000e+00> : vector<4x256xf32>
    %46 = tpu.matmul %45, %43, %cst_28 {dimension_numbers = #tpu.dot_dimension_numbers<[1], [0], [0], [1], [0, 0, 1, 1], [], []>} : vector<4x4xf32>, vector<4x256xf32>, vector<4x256xf32> -> vector<4x256xf32>
    %47 = arith.addf %38, %46 : vector<4x256xf32>
    %c15_i32 = arith.constant 15 : i32
    %48 = tpu.dynamic_rotate %30 by %c15_i32 dim 1 : vector<4x256xf32>, i32 -> vector<4x256xf32>
    %c2 = arith.constant 2 : index
    %c0_29 = arith.constant 0 : index
    %c0_30 = arith.constant 0 : index
    %49 = vector.load %arg6[%c2, %c0_29, %c0_30] : memref<9x1x256xf32, #tpu.memory_space<vmem>>, vector<1x1x256xf32>
    %50 = vector.shape_cast %49 : vector<1x1x256xf32> to vector<1x256xf32>
    %51 = vector.broadcast %50 : vector<1x256xf32> to vector<4x256xf32>
    %52 = arith.mulf %48, %51 : vector<4x256xf32>
    %c2_31 = arith.constant 2 : index
    %c0_32 = arith.constant 0 : index
    %c0_33 = arith.constant 0 : index
    %53 = vector.load %arg4[%c2_31, %c0_32, %c0_33] : memref<9x4x4xf32, #tpu.memory_space<vmem>>, vector<1x4x4xf32>
    %54 = vector.shape_cast %53 : vector<1x4x4xf32> to vector<4x4xf32>
    %cst_34 = arith.constant dense<0.000000e+00> : vector<4x256xf32>
    %55 = tpu.matmul %54, %52, %cst_34 {dimension_numbers = #tpu.dot_dimension_numbers<[1], [0], [0], [1], [0, 0, 1, 1], [], []>} : vector<4x4xf32>, vector<4x256xf32>, vector<4x256xf32> -> vector<4x256xf32>
    %56 = arith.addf %47, %55 : vector<4x256xf32>
    %c1_i32 = arith.constant 1 : i32
    %57 = tpu.dynamic_rotate %30 by %c1_i32 dim 1 : vector<4x256xf32>, i32 -> vector<4x256xf32>
    %c3 = arith.constant 3 : index
    %c0_35 = arith.constant 0 : index
    %c0_36 = arith.constant 0 : index
    %58 = vector.load %arg6[%c3, %c0_35, %c0_36] : memref<9x1x256xf32, #tpu.memory_space<vmem>>, vector<1x1x256xf32>
    %59 = vector.shape_cast %58 : vector<1x1x256xf32> to vector<1x256xf32>
    %60 = vector.broadcast %59 : vector<1x256xf32> to vector<4x256xf32>
    %61 = arith.mulf %57, %60 : vector<4x256xf32>
    %c3_37 = arith.constant 3 : index
    %c0_38 = arith.constant 0 : index
    %c0_39 = arith.constant 0 : index
    %62 = vector.load %arg4[%c3_37, %c0_38, %c0_39] : memref<9x4x4xf32, #tpu.memory_space<vmem>>, vector<1x4x4xf32>
    %63 = vector.shape_cast %62 : vector<1x4x4xf32> to vector<4x4xf32>
    %cst_40 = arith.constant dense<0.000000e+00> : vector<4x256xf32>
    %64 = tpu.matmul %63, %61, %cst_40 {dimension_numbers = #tpu.dot_dimension_numbers<[1], [0], [0], [1], [0, 0, 1, 1], [], []>} : vector<4x4xf32>, vector<4x256xf32>, vector<4x256xf32> -> vector<4x256xf32>
    %65 = arith.addf %56, %64 : vector<4x256xf32>
    %c4 = arith.constant 4 : index
    %c0_41 = arith.constant 0 : index
    %c0_42 = arith.constant 0 : index
    %66 = vector.load %arg4[%c4, %c0_41, %c0_42] : memref<9x4x4xf32, #tpu.memory_space<vmem>>, vector<1x4x4xf32>
    %67 = vector.shape_cast %66 : vector<1x4x4xf32> to vector<4x4xf32>
    %cst_43 = arith.constant dense<0.000000e+00> : vector<4x256xf32>
    %68 = tpu.matmul %67, %30, %cst_43 {dimension_numbers = #tpu.dot_dimension_numbers<[1], [0], [0], [1], [0, 0, 1, 1], [], []>} : vector<4x4xf32>, vector<4x256xf32>, vector<4x256xf32> -> vector<4x256xf32>
    %69 = arith.addf %65, %68 : vector<4x256xf32>
    %c255_i32 = arith.constant 255 : i32
    %70 = tpu.dynamic_rotate %30 by %c255_i32 dim 1 : vector<4x256xf32>, i32 -> vector<4x256xf32>
    %c5 = arith.constant 5 : index
    %c0_44 = arith.constant 0 : index
    %c0_45 = arith.constant 0 : index
    %71 = vector.load %arg6[%c5, %c0_44, %c0_45] : memref<9x1x256xf32, #tpu.memory_space<vmem>>, vector<1x1x256xf32>
    %72 = vector.shape_cast %71 : vector<1x1x256xf32> to vector<1x256xf32>
    %73 = vector.broadcast %72 : vector<1x256xf32> to vector<4x256xf32>
    %74 = arith.mulf %70, %73 : vector<4x256xf32>
    %c5_46 = arith.constant 5 : index
    %c0_47 = arith.constant 0 : index
    %c0_48 = arith.constant 0 : index
    %75 = vector.load %arg4[%c5_46, %c0_47, %c0_48] : memref<9x4x4xf32, #tpu.memory_space<vmem>>, vector<1x4x4xf32>
    %76 = vector.shape_cast %75 : vector<1x4x4xf32> to vector<4x4xf32>
    %cst_49 = arith.constant dense<0.000000e+00> : vector<4x256xf32>
    %77 = tpu.matmul %76, %74, %cst_49 {dimension_numbers = #tpu.dot_dimension_numbers<[1], [0], [0], [1], [0, 0, 1, 1], [], []>} : vector<4x4xf32>, vector<4x256xf32>, vector<4x256xf32> -> vector<4x256xf32>
    %78 = arith.addf %69, %77 : vector<4x256xf32>
    %c241_i32 = arith.constant 241 : i32
    %79 = tpu.dynamic_rotate %30 by %c241_i32 dim 1 : vector<4x256xf32>, i32 -> vector<4x256xf32>
    %c6 = arith.constant 6 : index
    %c0_50 = arith.constant 0 : index
    %c0_51 = arith.constant 0 : index
    %80 = vector.load %arg6[%c6, %c0_50, %c0_51] : memref<9x1x256xf32, #tpu.memory_space<vmem>>, vector<1x1x256xf32>
    %81 = vector.shape_cast %80 : vector<1x1x256xf32> to vector<1x256xf32>
    %82 = vector.broadcast %81 : vector<1x256xf32> to vector<4x256xf32>
    %83 = arith.mulf %79, %82 : vector<4x256xf32>
    %c6_52 = arith.constant 6 : index
    %c0_53 = arith.constant 0 : index
    %c0_54 = arith.constant 0 : index
    %84 = vector.load %arg4[%c6_52, %c0_53, %c0_54] : memref<9x4x4xf32, #tpu.memory_space<vmem>>, vector<1x4x4xf32>
    %85 = vector.shape_cast %84 : vector<1x4x4xf32> to vector<4x4xf32>
    %cst_55 = arith.constant dense<0.000000e+00> : vector<4x256xf32>
    %86 = tpu.matmul %85, %83, %cst_55 {dimension_numbers = #tpu.dot_dimension_numbers<[1], [0], [0], [1], [0, 0, 1, 1], [], []>} : vector<4x4xf32>, vector<4x256xf32>, vector<4x256xf32> -> vector<4x256xf32>
    %87 = arith.addf %78, %86 : vector<4x256xf32>
    %c240_i32 = arith.constant 240 : i32
    %88 = tpu.dynamic_rotate %30 by %c240_i32 dim 1 : vector<4x256xf32>, i32 -> vector<4x256xf32>
    %c7 = arith.constant 7 : index
    %c0_56 = arith.constant 0 : index
    %c0_57 = arith.constant 0 : index
    %89 = vector.load %arg6[%c7, %c0_56, %c0_57] : memref<9x1x256xf32, #tpu.memory_space<vmem>>, vector<1x1x256xf32>
    %90 = vector.shape_cast %89 : vector<1x1x256xf32> to vector<1x256xf32>
    %91 = vector.broadcast %90 : vector<1x256xf32> to vector<4x256xf32>
    %92 = arith.mulf %88, %91 : vector<4x256xf32>
    %c7_58 = arith.constant 7 : index
    %c0_59 = arith.constant 0 : index
    %c0_60 = arith.constant 0 : index
    %93 = vector.load %arg4[%c7_58, %c0_59, %c0_60] : memref<9x4x4xf32, #tpu.memory_space<vmem>>, vector<1x4x4xf32>
    %94 = vector.shape_cast %93 : vector<1x4x4xf32> to vector<4x4xf32>
    %cst_61 = arith.constant dense<0.000000e+00> : vector<4x256xf32>
    %95 = tpu.matmul %94, %92, %cst_61 {dimension_numbers = #tpu.dot_dimension_numbers<[1], [0], [0], [1], [0, 0, 1, 1], [], []>} : vector<4x4xf32>, vector<4x256xf32>, vector<4x256xf32> -> vector<4x256xf32>
    %96 = arith.addf %87, %95 : vector<4x256xf32>
    %c239_i32 = arith.constant 239 : i32
    %97 = tpu.dynamic_rotate %30 by %c239_i32 dim 1 : vector<4x256xf32>, i32 -> vector<4x256xf32>
    %c8 = arith.constant 8 : index
    %c0_62 = arith.constant 0 : index
    %c0_63 = arith.constant 0 : index
    %98 = vector.load %arg6[%c8, %c0_62, %c0_63] : memref<9x1x256xf32, #tpu.memory_space<vmem>>, vector<1x1x256xf32>
    %99 = vector.shape_cast %98 : vector<1x1x256xf32> to vector<1x256xf32>
    %100 = vector.broadcast %99 : vector<1x256xf32> to vector<4x256xf32>
    %101 = arith.mulf %97, %100 : vector<4x256xf32>
    %c8_64 = arith.constant 8 : index
    %c0_65 = arith.constant 0 : index
    %c0_66 = arith.constant 0 : index
    %102 = vector.load %arg4[%c8_64, %c0_65, %c0_66] : memref<9x4x4xf32, #tpu.memory_space<vmem>>, vector<1x4x4xf32>
    %103 = vector.shape_cast %102 : vector<1x4x4xf32> to vector<4x4xf32>
    %cst_67 = arith.constant dense<0.000000e+00> : vector<4x256xf32>
    %104 = tpu.matmul %103, %101, %cst_67 {dimension_numbers = #tpu.dot_dimension_numbers<[1], [0], [0], [1], [0, 0, 1, 1], [], []>} : vector<4x4xf32>, vector<4x256xf32>, vector<4x256xf32> -> vector<4x256xf32>
    %105 = arith.addf %96, %104 : vector<4x256xf32>
    %c2_68 = arith.constant 2 : index
    %c0_69 = arith.constant 0 : index
    %c0_70 = arith.constant 0 : index
    %106 = vector.load %arg5[%c2_68, %c0_69, %c0_70] : memref<4x4x1xf32, #tpu.memory_space<vmem>>, vector<1x4x1xf32>
    %107 = vector.shape_cast %106 : vector<1x4x1xf32> to vector<4x1xf32>
    %c3_71 = arith.constant 3 : index
    %c0_72 = arith.constant 0 : index
    %c0_73 = arith.constant 0 : index
    %108 = vector.load %arg5[%c3_71, %c0_72, %c0_73] : memref<4x4x1xf32, #tpu.memory_space<vmem>>, vector<1x4x1xf32>
    %109 = vector.shape_cast %108 : vector<1x4x1xf32> to vector<4x1xf32>
    %cst_74 = arith.constant dense<0.000000e+00> : vector<4xf32>
    %110 = vector.multi_reduction <add>, %105, %cst_74 [1] : vector<4x256xf32> to vector<4xf32>
    %111 = vector.shape_cast %110 : vector<4xf32> to vector<4x1xf32>
    %112 = arith.mulf %105, %105 : vector<4x256xf32>
    %cst_75 = arith.constant dense<0.000000e+00> : vector<4xf32>
    %113 = vector.multi_reduction <add>, %112, %cst_75 [1] : vector<4x256xf32> to vector<4xf32>
    %114 = vector.shape_cast %113 : vector<4xf32> to vector<4x1xf32>
    %cst_76 = arith.constant 3.906250e-03 : f32
    %115 = vector.broadcast %cst_76 : f32 to vector<4x1xf32>
    %116 = arith.mulf %111, %115 : vector<4x1xf32>
    %cst_77 = arith.constant 3.906250e-03 : f32
    %117 = vector.broadcast %cst_77 : f32 to vector<4x1xf32>
    %118 = arith.mulf %114, %117 : vector<4x1xf32>
    %119 = arith.mulf %116, %116 : vector<4x1xf32>
    %120 = arith.subf %118, %119 : vector<4x1xf32>
    %cst_78 = arith.constant 9.99999974E-6 : f32
    %121 = vector.broadcast %cst_78 : f32 to vector<4x1xf32>
    %122 = arith.addf %120, %121 : vector<4x1xf32>
    %123 = math.rsqrt %122 : vector<4x1xf32>
    %124 = arith.mulf %107, %123 : vector<4x1xf32>
    %125 = vector.broadcast %116 : vector<4x1xf32> to vector<4x256xf32>
    %126 = arith.subf %105, %125 : vector<4x256xf32>
    %127 = vector.broadcast %124 : vector<4x1xf32> to vector<4x256xf32>
    %128 = arith.mulf %126, %127 : vector<4x256xf32>
    %129 = vector.broadcast %109 : vector<4x1xf32> to vector<4x256xf32>
    %130 = arith.addf %128, %129 : vector<4x256xf32>
    %c0_79 = arith.constant 0 : index
    %c0_80 = arith.constant 0 : index
    %c0_81 = arith.constant 0 : index
    %131 = vector.load %arg2[%c0_79, %c0_80, %c0_81] : memref<1x4x256xf32, #tpu.memory_space<vmem>>, vector<1x4x256xf32>
    %132 = vector.shape_cast %131 : vector<1x4x256xf32> to vector<4x256xf32>
    %133 = arith.addf %130, %132 : vector<4x256xf32>
    %c0_82 = arith.constant 0 : index
    %c0_83 = arith.constant 0 : index
    %c0_84 = arith.constant 0 : index
    %134 = vector.load %arg7[%c0_82, %c0_83, %c0_84] : memref<1x4x256xf32, #tpu.memory_space<vmem>>, vector<1x4x256xf32>
    %135 = vector.shape_cast %134 : vector<1x4x256xf32> to vector<4x256xf32>
    %136 = vector.shape_cast %133 : vector<4x256xf32> to vector<1x4x256xf32>
    tpu.vector_store %arg7[%c0_82, %c0_83, %c0_84], %136 {strides = array<i32>} : memref<1x4x256xf32, #tpu.memory_space<vmem>>, vector<1x4x256xf32>,
    return
  }
  func.func @transform_0(%arg0: i32) -> (i32, i32, i32) {
    %c0_i32 = arith.constant 0 : i32
    %c0_i32_0 = arith.constant 0 : i32
    %c0_i32_1 = arith.constant 0 : i32
    return %arg0, %c0_i32, %c0_i32_0 : i32, i32, i32
  }
  func.func @transform_1(%arg0: i32) -> (i32, i32, i32) {
    %c0_i32 = arith.constant 0 : i32
    %c0_i32_0 = arith.constant 0 : i32
    %c0_i32_1 = arith.constant 0 : i32
    return %arg0, %c0_i32, %c0_i32_0 : i32, i32, i32
  }
  func.func @transform_2(%arg0: i32) -> (i32, i32) {
    %c0_i32 = arith.constant 0 : i32
    %c0_i32_0 = arith.constant 0 : i32
    %c0_i32_1 = arith.constant 0 : i32
    return %c0_i32, %c0_i32_0 : i32, i32
  }
  func.func @transform_3(%arg0: i32) -> (i32, i32, i32) {
    %c0_i32 = arith.constant 0 : i32
    %c0_i32_0 = arith.constant 0 : i32
    %c0_i32_1 = arith.constant 0 : i32
    %c0_i32_2 = arith.constant 0 : i32
    return %c0_i32, %c0_i32_0, %c0_i32_1 : i32, i32, i32
  }
  func.func @transform_4(%arg0: i32) -> (i32, i32, i32) {
    %c0_i32 = arith.constant 0 : i32
    %c0_i32_0 = arith.constant 0 : i32
    %c0_i32_1 = arith.constant 0 : i32
    %c0_i32_2 = arith.constant 0 : i32
    return %c0_i32, %c0_i32_0, %c0_i32_1 : i32, i32, i32
  }
  func.func @transform_5(%arg0: i32) -> (i32, i32, i32) {
    %c0_i32 = arith.constant 0 : i32
    %c0_i32_0 = arith.constant 0 : i32
    %c0_i32_1 = arith.constant 0 : i32
    %c0_i32_2 = arith.constant 0 : i32
    return %c0_i32, %c0_i32_0, %c0_i32_1 : i32, i32, i32
  }
  func.func @transform_6(%arg0: i32) -> (i32, i32, i32) {
    %c0_i32 = arith.constant 0 : i32
    %c0_i32_0 = arith.constant 0 : i32
    %c0_i32_1 = arith.constant 0 : i32
    return %arg0, %c0_i32, %c0_i32_0 : i32, i32, i32
  }
}

</mosaic_0001>

<bundles_post_ra>
// kernel: tpu_custom_call.1
= control target key start
LH: loop header
LB: loop body
LE: loop exit
PB: predicated region body
PF: predicated region fallthrough
CT: control target
= control target key end

     0   :  { %11 = vsyncpa [#allocation3], 0  ;;  %s1972_s0 = inlined_call_operand.vmem [shape: f32[2,36,256], index: 0, kind: input, shape index: {}]   ;;  %s1973_s1 = inlined_call_operand.vmem [shape: f32[2,4,256], index: 1, kind: input, shape index: {}]   ;;  %s1974_s2 = inlined_call_operand.vmem [shape: f32[4,36], index: 2, kind: input, shape index: {}]   ;;  %s1975_s3 = inlined_call_operand.vmem [shape: f32[9,4,4], index: 3, kind: input, shape index: {}]   ;;  %s1976_s4 = inlined_call_operand.vmem [shape: f32[4,4,1], index: 4, kind: input, shape index: {}]   ;;  %s1977_s5 = inlined_call_operand.vmem [shape: f32[9,1,256], index: 5, kind: input, shape index: {}]   ;;  %s1978_s6 = inlined_call_operand.hbm [shape: f32[2,4,256], index: 6, kind: output, shape index: {}]  }
   0x1   :  { %13 = vsyncpa [#allocation3 + $0x1], 0  ;;  %s1722_s21 = smov 0   ;;  %s1724_s22 = smov 0  }
   0x2   :  { %s1726_s23 = smov 0   ;;  %s1728_s24 = smov 0  }
   0x3 LB: > { %s1743_s25 = sadd.s32 4294967295, %s1674_s24   ;;  %s1468_s26 = sadd.s32 4294967294, %s1674_s24   ;;  %s1674_s24 = sphi %s1728_s24, %s1984_s24   ;;  %s1670_s23 = sphi %s1726_s23, %s1983_s23   ;;  %s1666_s22 = sphi %s1724_s22, %s1982_s22   ;;  %s1662_s21 = sphi %s1722_s21, %s1981_s21  }
   0x4   : > { %s1747_s27 = sadd.s32 1, %s1674_s24   ;;  %s162_s28 = sadd.s32 1, %s1670_s23 }
   0x5   : > { %s159_s29 = ssub.s32 %s1674_s24, %s1747_s27  ;;  %p172_p0 = scmp.ne.s32.totalorder %s1670_s23, %s1666_s22 }
   0x6   : > { %p160_p1 = scmp.eq.s32.totalorder %s159_s29, 0  ;;  %p173_p2 = scmp.eq.s32.totalorder %s1743_s25, 1 }
   0x7   : > { %p178_p3 = scmp.ne.s32.totalorder %s1666_s22, %s1662_s21  ;;  %p179_p4 = scmp.eq.s32.totalorder %s1468_s26, 1 }
   0x8   : > { %s1758_s30 = scalar_select %p160_p1, %s1670_s23, %s162_s28  }
   0x9   : > { %p1760_p5 = por %p173_p2, %p172_p0  ;;  %p1764_p6 = por %p179_p4, %p178_p3 }
   0xa   : > { %p1471_p7 = scmp.ge.s32.totalorder %s1674_s24, 1  ;;  %p225_p8 = scmp.lt.s32.totalorder %s1674_s24, 3 }
   0xc   : > { %p226_p9 = pnand %p1471_p7, %p225_p8 }
   0xd   : > { %p260_p10 = scmp.lt.s32.totalorder (!%p226_p9), %s1743_s25, 1  ;;  %v1676_v0 = vmov (!%p226_p9), 0.0   ;;  %vm285_vm0 = vcmask (!%p226_p9), 1043456   ;;  %v270_v15 = vld [vmem:[%s1974_s2] sm:$0xf] (!%p226_p9)  ;;  %vm281_vm1 = vcmask (!%p226_p9), 293888   ;;  %v407_v48 = vlaneseq (!%p226_p9) }
   0xe   : > { %229 = sbr.rel (%p226_p9) target bundleno = 1247 (0x4df), region = 44  ;;  %356 = vmatprep.mubr.f32.mxu0 (!%p226_p9), %v1676_v0  ;;  %815 = vmatprep.mubr.f32.mxu1 (!%p226_p9), %v1676_v0  ;;  %v1677_v26 = vmov (!%p226_p9), 0   ;;  %v363_v36 = vld [vmem:[%s1976_s4] sm:$0xf] (!%p226_p9)  ;;  %v1479_v39 = vld [vmem:[%s1976_s4 + $0x4] sm:$0xf] (!%p226_p9) }
   0xf   : > { %1605 = vset.pattern.permute.xlu1 (!%p226_p9), %v1677_v26  ;;  %1606 = vset.pattern.permute.xlu0 (!%p226_p9), %v1677_v26  ;;  %s1678_s20 = smov (!%p226_p9), 1   ;;  %s1679_s26 = smov (!%p226_p9), 127   ;;  %v415_v49 = vshrl.u32 (!%p226_p9), %v407_v48, 7  ;;  %v1796_v50 = vand.u32 (!%p226_p9), 127, %v407_v48  ;;  %v1493_v53 = vld [vmem:[%s1977_s5 + $0x6] sm:$0x3] (!%p226_p9) }
  0x10   : > { %s1680_s28 = smov (!%p226_p9), 113   ;;  %s1681_s29 = smov (!%p226_p9), 17   ;;  %vm451_vm3 = vcmask (!%p226_p9), 31744   ;;  %v1494_v62 = vld [vmem:[%s1975_s3 + $0xc] sm:$0xf] (!%p226_p9) }
  0x11   : > { %s1683_s11 = smov (!%p226_p9), 112   ;;  %s1684_s12 = smov (!%p226_p9), 15   ;;  %v1798_v51 = vsub.s32 (!%p226_p9), 0, %v415_v49  ;;  %v1800_v52 = vsub.s32 (!%p226_p9), 1, %v415_v49  ;;  %vm722_vm2 = vcmp.lt.s32.totalorder (!%p226_p9), %v1796_v50, 1  ;;  %vm912_vm4 = vcmp.lt.s32.totalorder (!%p226_p9), %v1796_v50, 127 }
  0x12   : > { %v1502_v63 = vld [vmem:[%s1977_s5 + $0xa] sm:$0x3] (!%p226_p9)  ;;  %vm431_vm5 = vcmp.lt.s32.totalorder (!%p226_p9), %v1796_v50, 16  ;;  %vm1018_vm6 = vcmp.lt.s32.totalorder (!%p226_p9), %v1796_v50, 113  ;;  %v1503_v26 = vld [vmem:[%s1975_s3 + $0x14] sm:$0xf] (!%p226_p9) }
  0x13   : > { %v731_v54 = vrot.slane (!%p226_p9), %v1493_v53, %v1798_v51  ;;  %v735_v55 = vrot.slane (!%p226_p9), %v1493_v53, %v1800_v52  ;;  %vm409_vm7 = vcmp.lt.s32.totalorder (!%p226_p9), %v1796_v50, 17  ;;  %vm1124_vm8 = vcmp.lt.s32.totalorder (!%p226_p9), %v1796_v50, 112  ;;  %s257_s14 = sand.u32 (!%p226_p9), 1, %s1666_s22   ;;  %s1530_s16 = sshll.u32 (!%p226_p9), %s1743_s25, 7 }
  0x14   : > { %vm616_vm9 = vcmp.lt.s32.totalorder (!%p226_p9), %v1796_v50, 15  ;;  %vm1230_vm10 = vcmp.lt.s32.totalorder (!%p226_p9), %v1796_v50, 111  ;;  %s1472_s15 = sshll.u32 (!%p226_p9), %s257_s14, 3 }
  0x15   : > { %s1774_s9 = scalar_select %p260_p10, %s1743_s25, 1 }
  0x16   : > { %s259_s17 = scalar_lea.vmem [#allocation2], %s1472_s15  ;;  %s1686_s25 = smov [#allocation2]  }
  0x17   : > { %s1555_s10 = smul.u32 80, %s1774_s9 }
  0x19   : > { %s264_s13 = scalar_lea.vmem %s1972_s0, %s1555_s10  ;;  %s1682_s10 = smov 16  }
  0x1a   : > { %v272_v1 = vld [vmem:[%s264_s13 + $0x8] sm:$0xff]  ;;  %v274_v2 = vld [vmem:[%s264_s13 + $0x18] sm:$0xff]  ;;  %v271_v3 = vld [vmem:[%s264_s13] sm:$0xff] }
  0x1b   : > { %v1531_v4 = vpack.c.bf16 %v274_v2, %v272_v1  ;;  %v273_v5 = vld [vmem:[%s264_s13 + $0x10] sm:$0xff]  ;;  %v276_v6 = vld [vmem:[%s264_s13 + $0x28] sm:$0xff]  ;;  %v278_v7 = vld [vmem:[%s264_s13 + $0x38] sm:$0xff]  ;;  %v925_v2 = vrot.slane %v1502_v63, %v1800_v52 }
  0x1c   : > { %v1533_v8 = vpack.c.bf16 %v273_v5, %v271_v3  ;;  %v1535_v9 = vpack.c.bf16 %v278_v7, %v276_v6  ;;  %v275_v10 = vld [vmem:[%s264_s13 + $0x20] sm:$0xff]  ;;  %v277_v11 = vld [vmem:[%s264_s13 + $0x30] sm:$0xff]  ;;  %v280_v13 = vld [vmem:[%s264_s13 + $0x48] sm:$0xf] }
  0x1d   : > { %1532 = vmatprep.subr.bf16.mxu0 %v1531_v4  ;;  %v1537_v12 = vpack.c.bf16 %v277_v11, %v275_v10  ;;  %v279_v14 = vld [vmem:[%s264_s13 + $0x40] sm:$0xf]  ;;  %s1685_s13 = smov 111   ;;  %v921_v4 = vrot.slane %v1502_v63, %v1798_v51 }
  0x1e   : > { %1534 = vmatpush1.bf16.msra.mxu0 %v1533_v8  ;;  %v1498_v8 = vld [vmem:[%s1975_s3 + $0x10] sm:$0xf] }
  0x1f   : > { %1536 = vmatprep.subr.bf16.mxu0 %v1535_v9  ;;  %v1480_v9 = vld [vmem:[%s1977_s5 + $0x2] sm:$0x3] }
  0x22   : > { %1538 = vmatpush1.bf16.msra.mxu0 %v1537_v12 }
  0x23   : > { %1476 = vmatprep.subr.msk.mxu0 %vm285_vm0, %v280_v13  ;;  %v440_v13 = vrot.slane %v1480_v9, %v1798_v51 }
  0x26   : > { %1477 = vmatpush1.msk.msra.mxu0 %vm285_vm0, %v279_v14  ;;  %v444_v14 = vrot.slane %v1480_v9, %v1800_v52 }
  0x27   : > { %1478 = vmatmul.mubr.msk.f32.vlgmr.msra.gmra.mrb[0].mxu0 %vm281_vm1, %v270_v15  ;;  %v1507_v15 = vld [vmem:[%s1977_s5 + $0xc] sm:$0x3] }
  0x28   : > { %525 = vmatprep.mubr.f32.mxu0 %v1676_v0 }
  0xfa   : > { %v358_v16 = vpop.f32.mrb[0].mxu0 }
  0xfb   : > { %v371_v17 = vmul.f32 %v358_v16, %v358_v16  ;;  %v360_v18 = vpop.f32.mrb[1].mxu0  ;;  %v366_v19 = vsel %vm285_vm0, %v358_v16, 0.0 }
  0xfc   : > { %v372_v20 = vmul.f32 %v360_v18, %v360_v18  ;;  %v367_v21 = vsel %vm285_vm0, %v360_v18, 0.0 }
  0xfd   : > { %v368_v22 = vadd.f32 %v367_v21, %v366_v19  ;;  %v373_v23 = vsel %vm285_vm0, %v371_v17, 0.0 }
  0xfe   : > { %v374_v24 = vsel %vm285_vm0, %v372_v20, 0.0 }
  0xff   : > { %369 = vadd.xlane.f32.xlu0 %v368_v22  ;;  %v375_v25 = vadd.f32 %v374_v24, %v373_v23  ;;  %v1027_v22 = vrot.slane %v1507_v15, %v1798_v51  ;;  %v1031_v23 = vrot.slane %v1507_v15, %v1800_v52  ;;  %v412_v24 = vld [vmem:[%s1977_s5] sm:$0x3] }
 0x103   : > { %376 = vadd.xlane.f32.xlu0 %v375_v25  ;;  %v1481_v25 = vld [vmem:[%s1975_s3 + $0x4] sm:$0xf] }
 0x18c   : > { %v370_v27 = vpop.xlane.xlu0 %369 }
 0x18d   : > { %v378_v28 = vmul.f32 0.00390625, %v370_v27 }
 0x18f   : > { %v385_v29 = vsub.f32 %v358_v16, %v378_v28  ;;  %v386_v30 = vsub.f32 %v360_v18, %v378_v28  ;;  %v380_v32 = vmul.f32 %v378_v28, %v378_v28 }
 0x190   : > { %v377_v31 = vpop.xlane.xlu0 %376 }
 0x191   : > { %v379_v33 = vmul.f32 0.00390625, %v377_v31 }
 0x193   : > { %v381_v34 = vsub.f32 %v379_v33, %v380_v32  ;;  %v421_v33 = vrot.slane %v412_v24, %v1800_v52 }
 0x195   : > { %v382_v35 = vadd.f32 1e-05, %v381_v34  ;;  %v1512_v34 = vld [vmem:[%s1977_s5 + $0xe] sm:$0x3] }
 0x197   : > { %1608 = vrsqrt.f32 %v382_v35 }
 0x1a1   : > { %v1609_v37 = vpop.eup %1608 }
 0x1a2   : > { %v384_v38 = vmul.f32 %v1609_v37, %v363_v36 }
 0x1a4   : > { %389 = vperm.xlu1 %1605, %v384_v38  }
 0x1a8   : > { %396 = vperm.xlu1 %1605, %v1479_v39  }
 0x223   : > { %v390_v40 = vpop.permute.xlu1 %389 }
 0x224   : > { %v392_v41 = vmul.f32 %v390_v40, %v385_v29  ;;  %v393_v42 = vmul.f32 %v390_v40, %v386_v30  ;;  %v417_v30 = vrot.slane %v412_v24, %v1798_v51 }
 0x227   : > { %v397_v43 = vpop.permute.xlu1 %396 }
 0x228   : > { %v399_v44 = vadd.f32 %v397_v43, %v392_v41  ;;  %v400_v45 = vadd.f32 %v397_v43, %v393_v42  ;;  %v1133_v41 = vrot.slane %v1512_v34, %v1798_v51  ;;  %v1137_v42 = vrot.slane %v1512_v34, %v1800_v52  ;;  %v1488_v43 = vld [vmem:[%s1977_s5 + $0x4] sm:$0x3] }
 0x229   : > { %v625_v49 = vrot.slane %v1488_v43, %v1798_v51 }
 0x22a   : > { %v401_v46 = vmax.f32 %v399_v44, 0.0  ;;  %v402_v47 = vmax.f32 %v400_v45, 0.0  ;;  %v426_v44 = vld [vmem:[%s1975_s3] sm:$0xf]  ;;  %v1508_v45 = vld [vmem:[%s1975_s3 + $0x18] sm:$0xf] }
 0x22c   : > { %720 = vrot.lane.b32.xlu1 %v402_v47, %s1678_s20  ;;  %718 = vrot.lane.b32.xlu0 %v401_v46, %s1678_s20  ;;  %s1930_s20 = scalar_lea.hbm %s1978_s6, %s1530_s16 }
 0x230   : > { %908 = vrot.lane.b32.xlu1 %v401_v46, %s1679_s26  ;;  %1016 = vrot.lane.b32.xlu0 %v402_v47, %s1680_s28 }
 0x234   : > { %910 = vrot.lane.b32.xlu1 %v402_v47, %s1679_s26  ;;  %405 = vrot.lane.b32.xlu0 %v402_v47, %s1681_s29  ;;  %s1383_s26 = scalar_lea.sflag [#allocation3], %s257_s14 }
 0x238   : > { %427 = vrot.lane.b32.xlu1 %v401_v46, %s1682_s10  ;;  %1122 = vrot.lane.b32.xlu0 %v402_v47, %s1683_s11 }
 0x23c   : > { %429 = vrot.lane.b32.xlu1 %v402_v47, %s1682_s10  ;;  %614 = vrot.lane.b32.xlu0 %v402_v47, %s1684_s12  ;;  %s1529_s10 = sshll.u32 %s1774_s9, 3  ;;  %s1397_s9 = sshll.u32 %s259_s17, 4  ;;  %s1932_s9 = int_to_ptr.vmem [resolvable:$true] %s1397_s9 }
 0x240   : > { %1014 = vrot.lane.b32.xlu1 %v401_v46, %s1680_s28  ;;  %1228 = vrot.lane.b32.xlu0 %v402_v47, %s1685_s13  ;;  %s1612_s28 = scalar_lea.vmem %s1932_s9, 128 }
 0x241   : > { %p1613_p11 = scmp.ne.s32.totalorder %s1932_s9, %s1612_s28 }
 0x243   : > { %p1614_p12 = pnand %p1613_p11, %p1760_p5 }
 0x244   : > { %403 = vrot.lane.b32.xlu1 %v401_v46, %s1681_s29  ;;  %s1616_s29 = sshll.u32 %s1686_s25, 4  ;;  %s1617_s29 = int_to_ptr.vmem [resolvable:$false] %s1616_s29 }
 0x245   : > { %p1615_p13 = pneg %p1614_p12  ;;  %p1619_p0 = scmp.lt.s32.totalorder %s1932_s9, %s1617_s29 }
 0x248   : > { %1120 = vrot.lane.b32.xlu1 %v401_v46, %s1683_s11 }
 0x24c   : > { %612 = vrot.lane.b32.xlu1 %v401_v46, %s1684_s12 }
 0x250   : > { %1226 = vrot.lane.b32.xlu1 %v401_v46, %s1685_s13  ;;  %s269_s13 = scalar_lea.vmem %s1973_s1, %s1529_s10  ;;  %s1618_s10 = scalar_lea.vmem %s1617_s29, 256 }
 0x251   : > { %p1620_p1 = scmp.lt.s32.totalorder %s1618_s10, %s1612_s28 }
 0x253   : > { %p1621_p2 = por %p1620_p1, %p1619_p0 }
 0x255   : > { %p1622_p3 = pnand %p1621_p2, %p1615_p13 }
 0x29e   : > { %v721_v56 = vpop.permute.xlu1 %720  ;;  %v719_v57 = vpop.permute.xlu0 %718 }
 0x29f   : > { %v723_v58 = vsel %vm722_vm2, %v719_v57, %v721_v56  ;;  %v724_v59 = vsel %vm722_vm2, %v721_v56, %v719_v57  ;;  %v629_v56 = vrot.slane %v1488_v43, %v1800_v52  ;;  %v1517_v57 = vld [vmem:[%s1977_s5 + $0x10] sm:$0x3] }
 0x2a0   : > { %v738_v60 = vmul.f32 %v731_v54, %v724_v59  ;;  %v739_v61 = vmul.f32 %v735_v55, %v723_v58  ;;  %v1239_v63 = vrot.slane %v1517_v57, %v1798_v51 }
 0x2a2   : > { %v909_v1 = vpop.permute.xlu1 %908  ;;  %1495 = vmatprep.subr.msk.mxu1 %vm285_vm0, %v739_v61  ;;  %v1017_v10 = vpop.permute.xlu0 %1016 }
 0x2a3   : > { %1496 = vmatpush1.msk.msra.mxu1 %vm285_vm0, %v738_v60 }
 0x2a4   : > { %1497 = vmatmul.mubr.msk.f32.vlgmr.msra.gmra.mrb[0].mxu1 %vm451_vm3, %v1494_v62  ;;  %1499 = vmatprep.subr.msk.mxu1 %vm285_vm0, %v402_v47 }
 0x2a5   : > { %1500 = vmatpush1.msk.msra.mxu1 %vm285_vm0, %v401_v46  ;;  %899 = vmatprep.mubr.f32.mxu1 %v1676_v0 }
 0x2a6   : > { %v911_v3 = vpop.permute.xlu1 %910  ;;  %v406_v19 = vpop.permute.xlu0 %405 }
 0x2a7   : > { %v914_v5 = vsel %vm912_vm4, %v911_v3, %v909_v1  ;;  %v913_v6 = vsel %vm912_vm4, %v909_v1, %v911_v3  ;;  %v1243_v1 = vrot.slane %v1517_v57, %v1800_v52  ;;  %v1513_v3 = vld [vmem:[%s1975_s3 + $0x1c] sm:$0xf]  ;;  %v1518_v52 = vld [vmem:[%s1975_s3 + $0x20] sm:$0xf] }
 0x2a8   : > { %v929_v7 = vmul.f32 %v925_v2, %v914_v5  ;;  %v928_v12 = vmul.f32 %v921_v4, %v913_v6  ;;  %v1489_v2 = vld [vmem:[%s1975_s3 + $0x8] sm:$0xf] }
 0x2aa   : > { %v428_v11 = vpop.permute.xlu1 %427  ;;  %1504 = vmatprep.subr.msk.mxu1 %vm285_vm0, %v929_v7  ;;  %v1123_v35 = vpop.permute.xlu0 %1122 }
 0x2ac   : > { %1501 = vmatmul.mubr.msk.f32.vlgmr.msra.gmra.mrb[0].mxu1 %vm451_vm3, %v1498_v8 }
 0x2ad   : > { %1505 = vmatpush1.msk.msra.mxu1 %vm285_vm0, %v928_v12  ;;  %1005 = vmatprep.mubr.f32.mxu1 %v1676_v0 }
 0x2ae   : > { %v430_v16 = vpop.permute.xlu1 %429  ;;  %v615_v53 = vpop.permute.xlu0 %614 }
 0x2af   : > { %v432_v17 = vsel %vm431_vm5, %v428_v11, %v430_v16  ;;  %v433_v18 = vsel %vm431_vm5, %v430_v16, %v428_v11 }
 0x2b0   : > { %v447_v20 = vmul.f32 %v440_v13, %v433_v18  ;;  %v448_v21 = vmul.f32 %v444_v14, %v432_v17 }
 0x2b2   : > { %1482 = vmatprep.subr.msk.mxu0 %vm285_vm0, %v448_v21  ;;  %v1015_v27 = vpop.permute.xlu1 %1014  ;;  %v1229_v4 = vpop.permute.xlu0 %1228  ;;  %v1523_v21 = vld [vmem:[%s1976_s4 + $0xc] sm:$0xf] }
 0x2b3   : > { %v1019_v28 = vsel %vm1018_vm6, %v1015_v27, %v1017_v10  ;;  %v1020_v29 = vsel %vm1018_vm6, %v1017_v10, %v1015_v27  ;;  %1483 = vmatpush1.msk.msra.mxu0 %vm285_vm0, %v447_v20 }
 0x2b4   : > { %v1034_v31 = vmul.f32 %v1027_v22, %v1019_v28  ;;  %v1035_v32 = vmul.f32 %v1031_v23, %v1020_v29  ;;  %1484 = vmatmul.mubr.msk.f32.vlgmr.msra.gmra.mrb[2].mxu0 %vm451_vm3, %v1481_v25  ;;  %1506 = vmatmul.mubr.msk.f32.vlgmr.msra.gmra.mrb[0].mxu1 %vm451_vm3, %v1503_v26  ;;  %v1522_v29 = vld [vmem:[%s1976_s4 + $0x8] sm:$0xf] }
 0x2b5   : > { %605 = vmatprep.mubr.f32.mxu0 %v1676_v0  ;;  %1111 = vmatprep.mubr.f32.mxu1 %v1676_v0 }
 0x2b6   : > { %v404_v36 = vpop.permute.xlu1 %403  ;;  %1509 = vmatprep.subr.msk.mxu1 %vm285_vm0, %v1035_v32  ;;  %v1371_v32 = vld [vmem:[%s269_s13] sm:$0xff] }
 0x2b7   : > { %v410_v37 = vsel %vm409_vm7, %v404_v36, %v406_v19  ;;  %v411_v38 = vsel %vm409_vm7, %v406_v19, %v404_v36  ;;  %1510 = vmatpush1.msk.msra.mxu1 %vm285_vm0, %v1034_v31  ;;  %v1373_v36 = vcombine.high %v1371_v32, %v1371_v32 }
 0x2b8   : > { %v424_v39 = vmul.f32 %v417_v30, %v411_v38  ;;  %v425_v40 = vmul.f32 %v421_v33, %v410_v37 }
 0x2ba   : > { %v1121_v46 = vpop.permute.xlu1 %1120  ;;  %1485 = vmatprep.subr.msk.mxu0 %vm285_vm0, %v425_v40 }
 0x2bb   : > { %v1125_v47 = vsel %vm1124_vm8, %v1121_v46, %v1123_v35  ;;  %v1126_v48 = vsel %vm1124_vm8, %v1123_v35, %v1121_v46  ;;  %1486 = vmatpush1.msk.msra.mxu0 %vm285_vm0, %v424_v39 }
 0x2bc   : > { %v1140_v54 = vmul.f32 %v1133_v41, %v1125_v47  ;;  %v1141_v55 = vmul.f32 %v1137_v42, %v1126_v48  ;;  %1487 = vmatmul.mubr.msk.f32.vlgmr.msra.gmra.mrb[2].mxu0 %vm451_vm3, %v426_v44  ;;  %1511 = vmatmul.mubr.msk.f32.vlgmr.msra.gmra.mrb[0].mxu1 %vm451_vm3, %v1508_v45 }
 0x2bd   : > { %709 = vmatprep.mubr.f32.mxu0 %v1676_v0  ;;  %1217 = vmatprep.mubr.f32.mxu1 %v1676_v0 }
 0x2be   : > { %v613_v58 = vpop.permute.xlu1 %612  ;;  %1514 = vmatprep.subr.msk.mxu1 %vm285_vm0, %v1141_v55 }
 0x2bf   : > { %v617_v59 = vsel %vm616_vm9, %v613_v58, %v615_v53  ;;  %v618_v60 = vsel %vm616_vm9, %v615_v53, %v613_v58  ;;  %1515 = vmatpush1.msk.msra.mxu1 %vm285_vm0, %v1140_v54 }
 0x2c0   : > { %v632_v61 = vmul.f32 %v625_v49, %v618_v60  ;;  %v633_v62 = vmul.f32 %v629_v56, %v617_v59 }
 0x2c2   : > { %v1227_v5 = vpop.permute.xlu1 %1226  ;;  %1490 = vmatprep.subr.msk.mxu0 %vm285_vm0, %v633_v62 }
 0x2c3   : > { %v1231_v6 = vsel %vm1230_vm10, %v1227_v5, %v1229_v4  ;;  %v1232_v50 = vsel %vm1230_vm10, %v1229_v4, %v1227_v5  ;;  %1491 = vmatpush1.msk.msra.mxu0 %vm285_vm0, %v632_v61 }
 0x2c4   : > { %v1246_v7 = vmul.f32 %v1239_v63, %v1231_v6  ;;  %v1247_v51 = vmul.f32 %v1243_v1, %v1232_v50  ;;  %1492 = vmatmul.mubr.msk.f32.vlgmr.msra.gmra.mrb[2].mxu0 %vm451_vm3, %v1489_v2  ;;  %1516 = vmatmul.mubr.msk.f32.vlgmr.msra.gmra.mrb[0].mxu1 %vm451_vm3, %v1513_v3 }
 0x2c5   : > { %1323 = vmatprep.mubr.f32.mxu1 %v1676_v0 }
 0x2c6   : > { %1519 = vmatprep.subr.msk.mxu1 %vm285_vm0, %v1247_v51 }
 0x2c7   : > { %1520 = vmatpush1.msk.msra.mxu1 %vm285_vm0, %v1246_v7 }
 0x2cc   : > { %1521 = vmatmul.mubr.msk.f32.vlgmr.msra.gmra.mrb[0].mxu1 %vm451_vm3, %v1518_v52 }
 0x397   : > { %v711_v8 = vpop.f32.mrb[2].mxu0 }
 0x398   : > { %v713_v9 = vpop.f32.mrb[3].mxu0 }
 0x39f   : > { %v1325_v10 = vpop.f32.mrb[0].mxu1 }
 0x3a0   : > { %v1539_v11 = vadd.f32 %v1325_v10, %v711_v8  ;;  %v1327_v12 = vpop.f32.mrb[1].mxu1 }
 0x3a1   : > { %v1540_v13 = vadd.f32 %v1327_v12, %v713_v9 }
 0x3a2   : > { %v1336_v14 = vsel %vm285_vm0, %v1539_v11, 0.0  ;;  %v1341_v15 = vmul.f32 %v1539_v11, %v1539_v11 }
 0x3a3   : > { %v1337_v0 = vsel %vm285_vm0, %v1540_v13, 0.0  ;;  %v1342_v16 = vmul.f32 %v1540_v13, %v1540_v13 }
 0x3a4   : > { %v1338_v17 = vadd.f32 %v1337_v0, %v1336_v14  ;;  %v1343_v18 = vsel %vm285_vm0, %v1341_v15, 0.0 }
 0x3a5   : > { %v1344_v19 = vsel %vm285_vm0, %v1342_v16, 0.0 }
 0x3a6   : > { %1339 = vadd.xlane.f32.xlu1 %v1338_v17  ;;  %v1345_v20 = vadd.f32 %v1344_v19, %v1343_v18 }
 0x3a8   : > { %1346 = vadd.xlane.f32.xlu0 %v1345_v20 }
 0x3b7   : > { %1366 = vperm.xlu1 %1605, %v1523_v21  }
 0x433   : > { %v1340_v22 = vpop.xlane.xlu1 %1339 }
 0x434   : > { %v1348_v23 = vmul.f32 0.00390625, %v1340_v22 }
 0x435   : > { %v1347_v24 = vpop.xlane.xlu0 %1346 }
 0x436   : > { %v1349_v25 = vmul.f32 0.00390625, %v1347_v24  ;;  %v1350_v26 = vmul.f32 %v1348_v23, %v1348_v23  ;;  %v1355_v33 = vsub.f32 %v1539_v11, %v1348_v23  ;;  %v1356_v34 = vsub.f32 %v1540_v13, %v1348_v23 }
 0x437   : > { %v1367_v39 = vpop.permute.xlu1 %1366 }
 0x438   : > { %v1351_v27 = vsub.f32 %v1349_v25, %v1350_v26 }
 0x43a   : > { %v1352_v28 = vadd.f32 1e-05, %v1351_v27 }
 0x43c   : > { %1610 = vrsqrt.f32 %v1352_v28 }
 0x446   : > { %v1611_v30 = vpop.eup %1610 }
 0x447   : > { %v1354_v31 = vmul.f32 %v1611_v30, %v1522_v29 }
 0x449   : > { %1359 = vperm.xlu0 %1606, %v1354_v31  }
 0x4c8   : > { %v1360_v35 = vpop.permute.xlu0 %1359 }
 0x4c9   : > { %v1362_v37 = vmul.f32 %v1360_v35, %v1355_v33  ;;  %v1363_v38 = vmul.f32 %v1360_v35, %v1356_v34 }
 0x4cb   : > { %v1369_v40 = vadd.f32 %v1367_v39, %v1362_v37  ;;  %v1370_v41 = vadd.f32 %v1367_v39, %v1363_v38 }
 0x4cd   : > { %v1375_v42 = vadd.f32 %v1371_v32, %v1369_v40  ;;  %v1376_v43 = vadd.f32 %v1373_v36, %v1370_v41 }
 0x4cf   : > { %v1379_v44 = vcombine.low %v1375_v42, %v1376_v43 }
 0x4d1   : > { %1381 = vst [vmem:[%s259_s17] sm:$0xff] %v1379_v44 }
 0x4d2   : > { %1625 = shalt.err (!%p1622_p3)
}
 0x4d3   : > { %s1626_s11 = scalar_lea.hbm %s1930_s20, 128  ;;  %s1630_s14 = scalar_lea.hbm %s1978_s6, 256 }
 0x4d4   : > { %p1627_p4 = scmp.ne.s32.totalorder %s1930_s20, %s1626_s11  ;;  %p1631_p9 = scmp.lt.u32.totalorder %s1930_s20, %s1978_s6 }
 0x4d5   : > { %p1632_p10 = scmp.lt.u32.totalorder %s1630_s14, %s1626_s11  ;;  %p1634_p12 = scmp.lt.u32.totalorder %s1626_s11, %s1930_s20 }
 0x4d6   : > { %p1628_p7 = pnand %p1627_p4, %p1760_p5 }
 0x4d7   : > { %p1633_p11 = por %p1632_p10, %p1631_p9 }
 0x4d8   : > { %p1629_p8 = pneg %p1628_p7 }
 0x4d9   : > { %p1635_p13 = por %p1634_p12, %p1633_p11 }
 0x4db   : > { %p1636_p0 = pnand %p1635_p13, %p1629_p8 }
 0x4dd   : > { %1639 = shalt.err (!%p1636_p0)
}
 0x4de   : > { %1556 = dma.vmem_to_hbm [thread:$0]  (%p1760_p5), %s1932_s9, 128, %s1930_s20, %s1383_s26  }
 0x4df PF: > { %p1562_p1 = scmp.ge.s32.totalorder %s1674_s24, 2  ;;  %s1409_s17 = sand.u32 1, %s1662_s21  }
 0x4e0   : > { %s1410_s18 = scalar_lea.sflag [#allocation3], %s1409_s17 }
 0x4e1   : > { %p1559_p2 = pnand %p1562_p1, %p1764_p6 }
 0x4e3   : > { %1657 = dma.done.wait (!%p1559_p2), %s1410_s18, 128  }
 0x4e4   : > { %1659 = vsyncadd (!%p1559_p2), %s1410_s18, 4294967168  ;;  %p16_p3 = scmp.ge.s32.totalorder %s1747_s27, 4   ;;  %s1981_s21 = smov %s1666_s22 }
 0x4e5   : > { %s1982_s22 = smov %s1670_s23  ;;  %s1983_s23 = smov %s1758_s30 }
 0x4e6   : > { %s1984_s24 = smov %s1747_s27  ;;  %18 = sbr.rel (!%p16_p3) target bundleno = 3 (0x3), region = 100 }
 0x4ed   :  { %1415 = vsyncpa [#allocation3], 1 }
 0x4ee   :  { %1417 = vsyncpa [#allocation3 + $0x1], 1 }

</bundles_post_ra>
